<compile_context>
chip_gen: v5e
topology: v5e:2x2
jax: 0.10.0
libtpu: 0.0.40
codegen_flags: <defaults>
</compile_context>

<pallas_src>
import functools

import jax
import jax.numpy as jnp
from jax import lax
from jax.experimental import pallas as pl
from jax.experimental.pallas import tpu as pltpu


def _round_up(x, m):
    return ((x + m - 1) // m) * m


def _vmem_limit_bytes(frac=0.75):
    """Scoped-VMEM limit with headroom for compiler-internal scratch."""
    cap = None
    try:
        info = pltpu.get_tpu_info()
        cap = getattr(info, "vmem_capacity_bytes", None)
    except Exception:
        cap = None
    if not cap:
        cap = 64 * 1024 * 1024  # conservative fallback = v7x per-TC physical VMEM
    return int(cap * frac)


def _gelu(x, approx):
    if approx:
        # tanh-approx GELU: transcendental goes to the (otherwise idle) EUP slot instead
        # of ~20 VALU ops/elem.  Numerics tradeoff vs torch nn.GELU(approximate='none').
        c = jnp.float32(0.7978845608028654)  # sqrt(2/pi)
        return 0.5 * x * (1.0 + jnp.tanh(c * (x + 0.044715 * (x * x * x))))
    # PyTorch nn.GELU() default (approximate='none'): 0.5*x*(1+erf(x/sqrt(2)))
    return 0.5 * x * (1.0 + lax.erf(x * jnp.float32(0.7071067811865476)))


# ---------------------------------------------------------------------------
# Kernels
# ---------------------------------------------------------------------------

def _rvs_kernel_resident(s_ref, r_ref, w_in_s_ref, w_in_r_ref, w_hid_ref,
                         w_head_ref, b_head_ref, o_ref, *, num_layers, gelu_approx):
    # s_ref:      (rt, state_dim)  bf16     r_ref:      (rt, 1)   f32
    # w_in_s_ref: (state_dim, Dp)  bf16     w_in_r_ref: (1, Dp)   f32
    # w_hid_ref:  (L, Dp, Dp)      bf16     w_head_ref: (Dp, Ap)  bf16
    # b_head_ref: (1, Ap)          f32      o_ref:      (rt, Ap)
    # Fused concat: h = states @ W_in[:S]  +  rtg * W_in[S]   (f32 accumulation)
    h = jnp.dot(s_ref[...], w_in_s_ref[...], preferred_element_type=jnp.float32)
    h = h + r_ref[...] * w_in_r_ref[...]           # f32 outer product (rtg fidelity)
    for layer in range(num_layers):                # static unroll at trace time
        h = _gelu(jnp.dot(h.astype(w_hid_ref.dtype), w_hid_ref[layer],
                          preferred_element_type=jnp.float32), gelu_approx)
    y = jnp.dot(h.astype(w_head_ref.dtype), w_head_ref[...],
                preferred_element_type=jnp.float32) + b_head_ref[...]
    o_ref[...] = jnp.tanh(y).astype(o_ref.dtype)


def _rvs_kernel_streamed(s_ref, r_ref, w_in_s_ref, w_in_r_ref, w_hid_ref,
                         w_head_ref, b_head_ref, o_ref, h_ref, *, gelu_approx):
    # grid = (row_tiles, num_layers); one (1, Dp, Dp) hidden weight is streamed per step.
    l = pl.program_id(1)

    @pl.when(l == 0)
    def _():
        h0 = jnp.dot(s_ref[...], w_in_s_ref[...], preferred_element_type=jnp.float32)
        h_ref[...] = h0 + r_ref[...] * w_in_r_ref[...]

    h = _gelu(jnp.dot(h_ref[...].astype(w_hid_ref.dtype), w_hid_ref[0],
                      preferred_element_type=jnp.float32), gelu_approx)
    h_ref[...] = h

    @pl.when(l == pl.num_programs(1) - 1)
    def _():
        y = jnp.dot(h.astype(w_head_ref.dtype), w_head_ref[...],
                    preferred_element_type=jnp.float32) + b_head_ref[...]
        o_ref[...] = jnp.tanh(y).astype(o_ref.dtype)


# ---------------------------------------------------------------------------
# Wrapper
# ---------------------------------------------------------------------------

def prepare_params(params, state_dim, *, compute_dtype=jnp.bfloat16):
    """Pad + cast the weights ONCE (keep this out of the per-call hot path)."""
    w_in, w_hid, w_head, b_head = params
    D = w_in.shape[1]
    num_layers = w_hid.shape[0]
    act_dim = w_head.shape[1]
    Dp = _round_up(D, 128)          # lane-dense hidden width (zero-padding is exact)
    Ap = _round_up(act_dim, 128)    # lane-dense output slab (unmasked stores)

    w_in_s = jnp.pad(w_in[:state_dim].astype(compute_dtype), ((0, 0), (0, Dp - D)))
    # rtg row of W_in stays f32 (the r * W_in_r term is computed on the VPU in f32).
    w_in_r = jnp.pad(w_in[state_dim:state_dim + 1].astype(jnp.float32),
                     ((0, 0), (0, Dp - D)))
    if num_layers == 0:
        w_hid_p = jnp.zeros((1, 8, 128), compute_dtype)   # tiny dummy; never read
    else:
        w_hid_p = jnp.pad(w_hid.astype(compute_dtype),
                          ((0, 0), (0, Dp - D), (0, Dp - D)))
    w_head_p = jnp.pad(w_head.astype(compute_dtype), ((0, Dp - D), (0, Ap - act_dim)))
    b_head_p = jnp.pad(b_head.reshape(1, -1).astype(jnp.float32),
                       ((0, 0), (0, Ap - act_dim)))
    return dict(w_in_s=w_in_s, w_in_r=w_in_r, w_hid=w_hid_p, w_head=w_head_p,
                b_head=b_head_p, state_dim=state_dim, D=D, Dp=Dp,
                act_dim=act_dim, Ap=Ap, num_layers=num_layers,
                compute_dtype=compute_dtype)


def rvs_forward(states, rtgs, prepared, *, row_tile=512,
                stream_threshold_bytes=16 * 1024 * 1024,
                stream_layers=None, gelu_approx=False):
    """states: (B, T, state_dim), rtgs: (B, T, 1) -> actions (B, T, act_dim)."""
    B, T, state_dim = states.shape
    assert state_dim == prepared["state_dim"]
    num_layers = prepared["num_layers"]
    Dp, Ap, act_dim = prepared["Dp"], prepared["Ap"], prepared["act_dim"]
    cdt = prepared["compute_dtype"]
    out_dtype = states.dtype

    N = B * T
    # --- row-tile selection: big tiles, multiple of 16, balanced tail, >=2 steps when possible ---
    num_tiles = max(-(-N // row_tile), 1)
    if num_tiles == 1 and N >= 32:
        num_tiles = 2                         # let v7x's 2nd TensorCore participate
    rt = _round_up(-(-N // num_tiles), 16)
    Np = _round_up(N, rt)
    grid_rows = Np // rt

    # ---- per-call layout plumbing is activations only (weights prepared once) ----
    s2d = states.reshape(N, state_dim).astype(cdt)
    r2d = rtgs.reshape(N, 1).astype(jnp.float32)         # rtg kept in f32
    if Np != N:
        s2d = jnp.pad(s2d, ((0, Np - N), (0, 0)))
        r2d = jnp.pad(r2d, ((0, Np - N), (0, 0)))

    hid_shape = prepared["w_hid"].shape
    if num_layers == 0:
        stream_layers = False
    elif stream_layers is None:
        stream_layers = prepared["w_hid"].nbytes > stream_threshold_bytes

    def run(single_buffer_weights):
        def wspec(shape, imap):
            # grid-invariant operands: one resident copy instead of a double buffer.
            if single_buffer_weights:
                return pl.BlockSpec(shape, imap, pipeline_mode=pl.Buffered(1))
            return pl.BlockSpec(shape, imap)

        if not stream_layers:
            kernel = functools.partial(_rvs_kernel_resident,
                                       num_layers=num_layers, gelu_approx=gelu_approx)
            grid = (grid_rows,)
            in_specs = [
                pl.BlockSpec((rt, state_dim), lambda i: (i, 0)),   # states rows
                pl.BlockSpec((rt, 1), lambda i: (i, 0)),           # rtg rows (f32)
                wspec((state_dim, Dp), lambda i: (0, 0)),          # W_in (state part)
                wspec((1, Dp), lambda i: (0, 0)),                  # W_in (rtg row, f32)
                wspec(hid_shape, lambda i: (0, 0, 0)),             # all hidden W's resident
                wspec((Dp, Ap), lambda i: (0, 0)),                 # W_head
                wspec((1, Ap), lambda i: (0, 0)),                  # b_head
            ]
            out_specs = pl.BlockSpec((rt, Ap), lambda i: (i, 0))
            scratch = []
            dim_sem = ("parallel",)
        else:
            kernel = functools.partial(_rvs_kernel_streamed, gelu_approx=gelu_approx)
            grid = (grid_rows, num_layers)
            in_specs = [
                pl.BlockSpec((rt, state_dim), lambda i, l: (i, 0)),
                pl.BlockSpec((rt, 1), lambda i, l: (i, 0)),
                wspec((state_dim, Dp), lambda i, l: (0, 0)),
                wspec((1, Dp), lambda i, l: (0, 0)),
                pl.BlockSpec((1, Dp, Dp), lambda i, l: (l, 0, 0)),  # stream one layer/step
                wspec((Dp, Ap), lambda i, l: (0, 0)),
                wspec((1, Ap), lambda i, l: (0, 0)),
            ]
            out_specs = pl.BlockSpec((rt, Ap), lambda i, l: (i, 0))
            scratch = [pltpu.VMEM((rt, Dp), jnp.float32)]           # h carried across layers
            dim_sem = ("parallel", "arbitrary")

        return pl.pallas_call(
            kernel,
            out_shape=jax.ShapeDtypeStruct((Np, Ap), out_dtype),
            grid_spec=pltpu.PrefetchScalarGridSpec(
                num_scalar_prefetch=0,
                grid=grid,
                in_specs=in_specs,
                out_specs=out_specs,
                scratch_shapes=scratch),
            compiler_params=pltpu.CompilerParams(
                dimension_semantics=dim_sem,
                vmem_limit_bytes=_vmem_limit_bytes()),
        )(s2d, r2d, prepared["w_in_s"], prepared["w_in_r"], prepared["w_hid"],
          prepared["w_head"], prepared["b_head"])

    try:
        out = run(True)
    except Exception:
        # Fallback for Pallas versions without BlockSpec(pipeline_mode=...).
        out = run(False)

    return out[:N, :act_dim].reshape(B, T, act_dim)


# ---------------------------------------------------------------------------
# Params / reference
# ---------------------------------------------------------------------------

def init_params(key, state_dim, act_dim, model_dim, num_layers, scale=0.02):
    # Mirrors RvS.init_weights(): Linear weights ~ N(0, 0.02), biases zero.
    # Weights stored as (in_features, out_features)  (i.e. torch W.T).
    k_in, k_hid, k_head = jax.random.split(key, 3)
    w_in = scale * jax.random.normal(k_in, (state_dim + 1, model_dim), jnp.float32)
    w_hid = scale * jax.random.normal(k_hid, (num_layers, model_dim, model_dim), jnp.float32)
    w_head = scale * jax.random.normal(k_head, (model_dim, act_dim), jnp.float32)
    b_head = jnp.zeros((1, act_dim), jnp.float32)   # head Linear has bias (PyTorch default)
    return w_in, w_hid, w_head, b_head


def rvs_reference(states, rtgs, params):
    # Pure-f32 reference matching the PyTorch module.
    w_in, w_hid, w_head, b_head = params
    x = jnp.concatenate([states, rtgs], axis=-1)
    h = x @ w_in
    for layer in range(w_hid.shape[0]):
        h = _gelu(h @ w_hid[layer], approx=False)
    return jnp.tanh(h @ w_head + b_head.reshape(1, -1))


if __name__ == "__main__":
    # Small, module-consistent shapes.
    B, T = 2, 8
    state_dim, act_dim, model_dim, num_layers = 4, 4, 32, 2

    key = jax.random.PRNGKey(0)
    k_s, k_r, k_p = jax.random.split(key, 3)
    states = jax.random.normal(k_s, (B, T, state_dim), jnp.float32)
    rtgs = jax.random.normal(k_r, (B, T, 1), jnp.float32)

    # Check 1: module-faithful init (std=0.02 weights, zero bias), resident-weights path.
    params = init_params(k_p, state_dim, act_dim, model_dim, num_layers)
    prepared = prepare_params(params, state_dim)
    out = jax.block_until_ready(rvs_forward(states, rtgs, prepared))
    ref = rvs_reference(states, rtgs, params)
    assert out.shape == (B, T, act_dim)
    assert jnp.allclose(out, ref, atol=1e-2, rtol=1e-2), "Pallas (resident) mismatch vs reference"

    # Check 2: layer-streamed path (what large-D / deep configs use to fit v7x VMEM).
    out_s = jax.block_until_ready(rvs_forward(states, rtgs, prepared, stream_layers=True))
    assert jnp.allclose(out_s, ref, atol=1e-2, rtol=1e-2), "Pallas (streamed) mismatch vs reference"

    # Check 3: larger weight scale to meaningfully exercise the bf16 matmul path
    # (tolerance loosened for bf16 operands / f32 accumulation).
    params2 = init_params(jax.random.PRNGKey(1), state_dim, act_dim, model_dim, num_layers,
                          scale=0.3)
    prepared2 = prepare_params(params2, state_dim)
    out2 = jax.block_until_ready(rvs_forward(states, rtgs, prepared2))
    ref2 = rvs_reference(states, rtgs, params2)
    assert jnp.allclose(out2, ref2, atol=5e-2, rtol=5e-2), "Pallas bf16 path mismatch vs reference"

    print("KERNEL_OK")
</pallas_src>

<mosaic_0001>
module attributes {stable_mosaic.version = 11 : i64} {
  func.func @_rvs_kernel_resident(%arg0: i32, %arg1: memref<16x4xbf16, #tpu.memory_space<vmem>>, %arg2: memref<16x1xf32, #tpu.memory_space<vmem>>, %arg3: memref<4x128xbf16, #tpu.memory_space<vmem>>, %arg4: memref<1x128xf32, #tpu.memory_space<vmem>>, %arg5: memref<2x128x128xbf16, #tpu.memory_space<vmem>>, %arg6: memref<128x128xbf16, #tpu.memory_space<vmem>>, %arg7: memref<1x128xf32, #tpu.memory_space<vmem>>, %arg8: memref<16x128xf32, #tpu.memory_space<vmem>>) attributes {dimension_semantics = [#tpu.dimension_semantics<parallel>], iteration_bounds = array<i64: 1>, scalar_prefetch = 0 : i64, scratch_operands = 0 : i64, tpu.core_type = #tpu.core_type<tc>, window_params = [{transform_indices = @transform_0, window_bounds = array<i64: 16, 4>}, {transform_indices = @transform_1, window_bounds = array<i64: 16, 1>}, {pipeline_mode = #tpu.pipeline_mode<synchronous>, transform_indices = @transform_2, window_bounds = array<i64: 4, 128>}, {pipeline_mode = #tpu.pipeline_mode<synchronous>, transform_indices = @transform_3, window_bounds = array<i64: 1, 128>}, {pipeline_mode = #tpu.pipeline_mode<synchronous>, transform_indices = @transform_4, window_bounds = array<i64: 2, 128, 128>}, {pipeline_mode = #tpu.pipeline_mode<synchronous>, transform_indices = @transform_5, window_bounds = array<i64: 128, 128>}, {pipeline_mode = #tpu.pipeline_mode<synchronous>, transform_indices = @transform_6, window_bounds = array<i64: 1, 128>}, {transform_indices = @transform_7, window_bounds = array<i64: 16, 128>}]} {
    %c0 = arith.constant 0 : index
    %c0_0 = arith.constant 0 : index
    %0 = vector.load %arg1[%c0, %c0_0] : memref<16x4xbf16, #tpu.memory_space<vmem>>, vector<16x4xbf16>
    %c0_1 = arith.constant 0 : index
    %c0_2 = arith.constant 0 : index
    %1 = vector.load %arg3[%c0_1, %c0_2] : memref<4x128xbf16, #tpu.memory_space<vmem>>, vector<4x128xbf16>
    %cst = arith.constant dense<0.000000e+00> : vector<16x128xf32>
    %2 = tpu.matmul %0, %1, %cst {dimension_numbers = #tpu.dot_dimension_numbers<[1], [0], [0], [1], [0, 0, 1, 1], [], []>} : vector<16x4xbf16>, vector<4x128xbf16>, vector<16x128xf32> -> vector<16x128xf32>
    %c0_3 = arith.constant 0 : index
    %c0_4 = arith.constant 0 : index
    %3 = vector.load %arg2[%c0_3, %c0_4] : memref<16x1xf32, #tpu.memory_space<vmem>>, vector<16x1xf32>
    %c0_5 = arith.constant 0 : index
    %c0_6 = arith.constant 0 : index
    %4 = vector.load %arg4[%c0_5, %c0_6] : memref<1x128xf32, #tpu.memory_space<vmem>>, vector<1x128xf32>
    %5 = vector.broadcast %3 : vector<16x1xf32> to vector<16x128xf32>
    %6 = vector.broadcast %4 : vector<1x128xf32> to vector<16x128xf32>
    %7 = arith.mulf %5, %6 : vector<16x128xf32>
    %8 = arith.addf %2, %7 : vector<16x128xf32>
    %9 = arith.truncf %8 : vector<16x128xf32> to vector<16x128xbf16>
    %c0_7 = arith.constant 0 : index
    %c0_8 = arith.constant 0 : index
    %c0_9 = arith.constant 0 : index
    %10 = vector.load %arg5[%c0_7, %c0_8, %c0_9] : memref<2x128x128xbf16, #tpu.memory_space<vmem>>, vector<1x128x128xbf16>
    %11 = vector.shape_cast %10 : vector<1x128x128xbf16> to vector<128x128xbf16>
    %cst_10 = arith.constant dense<0.000000e+00> : vector<16x128xf32>
    %12 = tpu.matmul %9, %11, %cst_10 {dimension_numbers = #tpu.dot_dimension_numbers<[1], [0], [0], [1], [0, 0, 1, 1], [], []>} : vector<16x128xbf16>, vector<128x128xbf16>, vector<16x128xf32> -> vector<16x128xf32>
    %cst_11 = arith.constant 5.000000e-01 : f32
    %13 = vector.broadcast %cst_11 : f32 to vector<16x128xf32>
    %14 = arith.mulf %13, %12 : vector<16x128xf32>
    %cst_12 = arith.constant 0.707106769 : f32
    %15 = vector.broadcast %cst_12 : f32 to vector<16x128xf32>
    %16 = arith.mulf %12, %15 : vector<16x128xf32>
    %17 = math.erf %16 : vector<16x128xf32>
    %cst_13 = arith.constant 1.000000e+00 : f32
    %18 = vector.broadcast %cst_13 : f32 to vector<16x128xf32>
    %19 = arith.addf %18, %17 : vector<16x128xf32>
    %20 = arith.mulf %14, %19 : vector<16x128xf32>
    %21 = arith.truncf %20 : vector<16x128xf32> to vector<16x128xbf16>
    %c1 = arith.constant 1 : index
    %c0_14 = arith.constant 0 : index
    %c0_15 = arith.constant 0 : index
    %22 = vector.load %arg5[%c1, %c0_14, %c0_15] : memref<2x128x128xbf16, #tpu.memory_space<vmem>>, vector<1x128x128xbf16>
    %23 = vector.shape_cast %22 : vector<1x128x128xbf16> to vector<128x128xbf16>
    %cst_16 = arith.constant dense<0.000000e+00> : vector<16x128xf32>
    %24 = tpu.matmul %21, %23, %cst_16 {dimension_numbers = #tpu.dot_dimension_numbers<[1], [0], [0], [1], [0, 0, 1, 1], [], []>} : vector<16x128xbf16>, vector<128x128xbf16>, vector<16x128xf32> -> vector<16x128xf32>
    %cst_17 = arith.constant 5.000000e-01 : f32
    %25 = vector.broadcast %cst_17 : f32 to vector<16x128xf32>
    %26 = arith.mulf %25, %24 : vector<16x128xf32>
    %cst_18 = arith.constant 0.707106769 : f32
    %27 = vector.broadcast %cst_18 : f32 to vector<16x128xf32>
    %28 = arith.mulf %24, %27 : vector<16x128xf32>
    %29 = math.erf %28 : vector<16x128xf32>
    %cst_19 = arith.constant 1.000000e+00 : f32
    %30 = vector.broadcast %cst_19 : f32 to vector<16x128xf32>
    %31 = arith.addf %30, %29 : vector<16x128xf32>
    %32 = arith.mulf %26, %31 : vector<16x128xf32>
    %33 = arith.truncf %32 : vector<16x128xf32> to vector<16x128xbf16>
    %c0_20 = arith.constant 0 : index
    %c0_21 = arith.constant 0 : index
    %34 = vector.load %arg6[%c0_20, %c0_21] : memref<128x128xbf16, #tpu.memory_space<vmem>>, vector<128x128xbf16>
    %cst_22 = arith.constant dense<0.000000e+00> : vector<16x128xf32>
    %35 = tpu.matmul %33, %34, %cst_22 {dimension_numbers = #tpu.dot_dimension_numbers<[1], [0], [0], [1], [0, 0, 1, 1], [], []>} : vector<16x128xbf16>, vector<128x128xbf16>, vector<16x128xf32> -> vector<16x128xf32>
    %c0_23 = arith.constant 0 : index
    %c0_24 = arith.constant 0 : index
    %36 = vector.load %arg7[%c0_23, %c0_24] : memref<1x128xf32, #tpu.memory_space<vmem>>, vector<1x128xf32>
    %37 = vector.broadcast %36 : vector<1x128xf32> to vector<16x128xf32>
    %38 = arith.addf %35, %37 : vector<16x128xf32>
    %39 = math.tanh %38 : vector<16x128xf32>
    %c0_25 = arith.constant 0 : index
    %c0_26 = arith.constant 0 : index
    %40 = vector.load %arg8[%c0_25, %c0_26] : memref<16x128xf32, #tpu.memory_space<vmem>>, vector<16x128xf32>
    tpu.vector_store %arg8[%c0_25, %c0_26], %39 {strides = array<i32>} : memref<16x128xf32, #tpu.memory_space<vmem>>, vector<16x128xf32>,
    return
  }
  func.func @transform_0(%arg0: i32) -> (i32, i32) {
    %c0_i32 = arith.constant 0 : i32
    %c0_i32_0 = arith.constant 0 : i32
    return %arg0, %c0_i32 : i32, i32
  }
  func.func @transform_1(%arg0: i32) -> (i32, i32) {
    %c0_i32 = arith.constant 0 : i32
    %c0_i32_0 = arith.constant 0 : i32
    return %arg0, %c0_i32 : i32, i32
  }
  func.func @transform_2(%arg0: i32) -> (i32, i32) {
    %c0_i32 = arith.constant 0 : i32
    %c0_i32_0 = arith.constant 0 : i32
    %c0_i32_1 = arith.constant 0 : i32
    return %c0_i32, %c0_i32_0 : i32, i32
  }
  func.func @transform_3(%arg0: i32) -> (i32, i32) {
    %c0_i32 = arith.constant 0 : i32
    %c0_i32_0 = arith.constant 0 : i32
    %c0_i32_1 = arith.constant 0 : i32
    return %c0_i32, %c0_i32_0 : i32, i32
  }
  func.func @transform_4(%arg0: i32) -> (i32, i32, i32) {
    %c0_i32 = arith.constant 0 : i32
    %c0_i32_0 = arith.constant 0 : i32
    %c0_i32_1 = arith.constant 0 : i32
    %c0_i32_2 = arith.constant 0 : i32
    return %c0_i32, %c0_i32_0, %c0_i32_1 : i32, i32, i32
  }
  func.func @transform_5(%arg0: i32) -> (i32, i32) {
    %c0_i32 = arith.constant 0 : i32
    %c0_i32_0 = arith.constant 0 : i32
    %c0_i32_1 = arith.constant 0 : i32
    return %c0_i32, %c0_i32_0 : i32, i32
  }
  func.func @transform_6(%arg0: i32) -> (i32, i32) {
    %c0_i32 = arith.constant 0 : i32
    %c0_i32_0 = arith.constant 0 : i32
    %c0_i32_1 = arith.constant 0 : i32
    return %c0_i32, %c0_i32_0 : i32, i32
  }
  func.func @transform_7(%arg0: i32) -> (i32, i32) {
    %c0_i32 = arith.constant 0 : i32
    %c0_i32_0 = arith.constant 0 : i32
    return %arg0, %c0_i32 : i32, i32
  }
}

module attributes {stable_mosaic.version = 11 : i64} {
  func.func @_rvs_kernel_resident(%arg0: i32, %arg1: memref<16x4xbf16, #tpu.memory_space<vmem>>, %arg2: memref<16x1xf32, #tpu.memory_space<vmem>>, %arg3: memref<4x128xbf16, #tpu.memory_space<vmem>>, %arg4: memref<1x128xf32, #tpu.memory_space<vmem>>, %arg5: memref<2x128x128xbf16, #tpu.memory_space<vmem>>, %arg6: memref<128x128xbf16, #tpu.memory_space<vmem>>, %arg7: memref<1x128xf32, #tpu.memory_space<vmem>>, %arg8: memref<16x128xf32, #tpu.memory_space<vmem>>) attributes {dimension_semantics = [#tpu.dimension_semantics<parallel>], iteration_bounds = array<i64: 1>, scalar_prefetch = 0 : i64, scratch_operands = 0 : i64, tpu.core_type = #tpu.core_type<tc>, window_params = [{transform_indices = @transform_0, window_bounds = array<i64: 16, 4>}, {transform_indices = @transform_1, window_bounds = array<i64: 16, 1>}, {pipeline_mode = #tpu.pipeline_mode<synchronous>, transform_indices = @transform_2, window_bounds = array<i64: 4, 128>}, {pipeline_mode = #tpu.pipeline_mode<synchronous>, transform_indices = @transform_3, window_bounds = array<i64: 1, 128>}, {pipeline_mode = #tpu.pipeline_mode<synchronous>, transform_indices = @transform_4, window_bounds = array<i64: 2, 128, 128>}, {pipeline_mode = #tpu.pipeline_mode<synchronous>, transform_indices = @transform_5, window_bounds = array<i64: 128, 128>}, {pipeline_mode = #tpu.pipeline_mode<synchronous>, transform_indices = @transform_6, window_bounds = array<i64: 1, 128>}, {transform_indices = @transform_7, window_bounds = array<i64: 16, 128>}]} {
    %c0 = arith.constant 0 : index
    %c0_0 = arith.constant 0 : index
    %0 = vector.load %arg1[%c0, %c0_0] : memref<16x4xbf16, #tpu.memory_space<vmem>>, vector<16x4xbf16>
    %c0_1 = arith.constant 0 : index
    %c0_2 = arith.constant 0 : index
    %1 = vector.load %arg3[%c0_1, %c0_2] : memref<4x128xbf16, #tpu.memory_space<vmem>>, vector<4x128xbf16>
    %cst = arith.constant dense<0.000000e+00> : vector<16x128xf32>
    %2 = tpu.matmul %0, %1, %cst {dimension_numbers = #tpu.dot_dimension_numbers<[1], [0], [0], [1], [0, 0, 1, 1], [], []>} : vector<16x4xbf16>, vector<4x128xbf16>, vector<16x128xf32> -> vector<16x128xf32>
    %c0_3 = arith.constant 0 : index
    %c0_4 = arith.constant 0 : index
    %3 = vector.load %arg2[%c0_3, %c0_4] : memref<16x1xf32, #tpu.memory_space<vmem>>, vector<16x1xf32>
    %c0_5 = arith.constant 0 : index
    %c0_6 = arith.constant 0 : index
    %4 = vector.load %arg4[%c0_5, %c0_6] : memref<1x128xf32, #tpu.memory_space<vmem>>, vector<1x128xf32>
    %5 = vector.broadcast %3 : vector<16x1xf32> to vector<16x128xf32>
    %6 = vector.broadcast %4 : vector<1x128xf32> to vector<16x128xf32>
    %7 = arith.mulf %5, %6 : vector<16x128xf32>
    %8 = arith.addf %2, %7 : vector<16x128xf32>
    %9 = arith.truncf %8 : vector<16x128xf32> to vector<16x128xbf16>
    %c0_7 = arith.constant 0 : index
    %c0_8 = arith.constant 0 : index
    %c0_9 = arith.constant 0 : index
    %10 = vector.load %arg5[%c0_7, %c0_8, %c0_9] : memref<2x128x128xbf16, #tpu.memory_space<vmem>>, vector<1x128x128xbf16>
    %11 = vector.shape_cast %10 : vector<1x128x128xbf16> to vector<128x128xbf16>
    %cst_10 = arith.constant dense<0.000000e+00> : vector<16x128xf32>
    %12 = tpu.matmul %9, %11, %cst_10 {dimension_numbers = #tpu.dot_dimension_numbers<[1], [0], [0], [1], [0, 0, 1, 1], [], []>} : vector<16x128xbf16>, vector<128x128xbf16>, vector<16x128xf32> -> vector<16x128xf32>
    %cst_11 = arith.constant 5.000000e-01 : f32
    %13 = vector.broadcast %cst_11 : f32 to vector<16x128xf32>
    %14 = arith.mulf %13, %12 : vector<16x128xf32>
    %cst_12 = arith.constant 0.707106769 : f32
    %15 = vector.broadcast %cst_12 : f32 to vector<16x128xf32>
    %16 = arith.mulf %12, %15 : vector<16x128xf32>
    %17 = math.erf %16 : vector<16x128xf32>
    %cst_13 = arith.constant 1.000000e+00 : f32
    %18 = vector.broadcast %cst_13 : f32 to vector<16x128xf32>
    %19 = arith.addf %18, %17 : vector<16x128xf32>
    %20 = arith.mulf %14, %19 : vector<16x128xf32>
    %21 = arith.truncf %20 : vector<16x128xf32> to vector<16x128xbf16>
    %c1 = arith.constant 1 : index
    %c0_14 = arith.constant 0 : index
    %c0_15 = arith.constant 0 : index
    %22 = vector.load %arg5[%c1, %c0_14, %c0_15] : memref<2x128x128xbf16, #tpu.memory_space<vmem>>, vector<1x128x128xbf16>
    %23 = vector.shape_cast %22 : vector<1x128x128xbf16> to vector<128x128xbf16>
    %cst_16 = arith.constant dense<0.000000e+00> : vector<16x128xf32>
    %24 = tpu.matmul %21, %23, %cst_16 {dimension_numbers = #tpu.dot_dimension_numbers<[1], [0], [0], [1], [0, 0, 1, 1], [], []>} : vector<16x128xbf16>, vector<128x128xbf16>, vector<16x128xf32> -> vector<16x128xf32>
    %cst_17 = arith.constant 5.000000e-01 : f32
    %25 = vector.broadcast %cst_17 : f32 to vector<16x128xf32>
    %26 = arith.mulf %25, %24 : vector<16x128xf32>
    %cst_18 = arith.constant 0.707106769 : f32
    %27 = vector.broadcast %cst_18 : f32 to vector<16x128xf32>
    %28 = arith.mulf %24, %27 : vector<16x128xf32>
    %29 = math.erf %28 : vector<16x128xf32>
    %cst_19 = arith.constant 1.000000e+00 : f32
    %30 = vector.broadcast %cst_19 : f32 to vector<16x128xf32>
    %31 = arith.addf %30, %29 : vector<16x128xf32>
    %32 = arith.mulf %26, %31 : vector<16x128xf32>
    %33 = arith.truncf %32 : vector<16x128xf32> to vector<16x128xbf16>
    %c0_20 = arith.constant 0 : index
    %c0_21 = arith.constant 0 : index
    %34 = vector.load %arg6[%c0_20, %c0_21] : memref<128x128xbf16, #tpu.memory_space<vmem>>, vector<128x128xbf16>
    %cst_22 = arith.constant dense<0.000000e+00> : vector<16x128xf32>
    %35 = tpu.matmul %33, %34, %cst_22 {dimension_numbers = #tpu.dot_dimension_numbers<[1], [0], [0], [1], [0, 0, 1, 1], [], []>} : vector<16x128xbf16>, vector<128x128xbf16>, vector<16x128xf32> -> vector<16x128xf32>
    %c0_23 = arith.constant 0 : index
    %c0_24 = arith.constant 0 : index
    %36 = vector.load %arg7[%c0_23, %c0_24] : memref<1x128xf32, #tpu.memory_space<vmem>>, vector<1x128xf32>
    %37 = vector.broadcast %36 : vector<1x128xf32> to vector<16x128xf32>
    %38 = arith.addf %35, %37 : vector<16x128xf32>
    %39 = math.tanh %38 : vector<16x128xf32>
    %c0_25 = arith.constant 0 : index
    %c0_26 = arith.constant 0 : index
    %40 = vector.load %arg8[%c0_25, %c0_26] : memref<16x128xf32, #tpu.memory_space<vmem>>, vector<16x128xf32>
    tpu.vector_store %arg8[%c0_25, %c0_26], %39 {strides = array<i32>} : memref<16x128xf32, #tpu.memory_space<vmem>>, vector<16x128xf32>,
    return
  }
  func.func @transform_0(%arg0: i32) -> (i32, i32) {
    %c0_i32 = arith.constant 0 : i32
    %c0_i32_0 = arith.constant 0 : i32
    return %arg0, %c0_i32 : i32, i32
  }
  func.func @transform_1(%arg0: i32) -> (i32, i32) {
    %c0_i32 = arith.constant 0 : i32
    %c0_i32_0 = arith.constant 0 : i32
    return %arg0, %c0_i32 : i32, i32
  }
  func.func @transform_2(%arg0: i32) -> (i32, i32) {
    %c0_i32 = arith.constant 0 : i32
    %c0_i32_0 = arith.constant 0 : i32
    %c0_i32_1 = arith.constant 0 : i32
    return %c0_i32, %c0_i32_0 : i32, i32
  }
  func.func @transform_3(%arg0: i32) -> (i32, i32) {
    %c0_i32 = arith.constant 0 : i32
    %c0_i32_0 = arith.constant 0 : i32
    %c0_i32_1 = arith.constant 0 : i32
    return %c0_i32, %c0_i32_0 : i32, i32
  }
  func.func @transform_4(%arg0: i32) -> (i32, i32, i32) {
    %c0_i32 = arith.constant 0 : i32
    %c0_i32_0 = arith.constant 0 : i32
    %c0_i32_1 = arith.constant 0 : i32
    %c0_i32_2 = arith.constant 0 : i32
    return %c0_i32, %c0_i32_0, %c0_i32_1 : i32, i32, i32
  }
  func.func @transform_5(%arg0: i32) -> (i32, i32) {
    %c0_i32 = arith.constant 0 : i32
    %c0_i32_0 = arith.constant 0 : i32
    %c0_i32_1 = arith.constant 0 : i32
    return %c0_i32, %c0_i32_0 : i32, i32
  }
  func.func @transform_6(%arg0: i32) -> (i32, i32) {
    %c0_i32 = arith.constant 0 : i32
    %c0_i32_0 = arith.constant 0 : i32
    %c0_i32_1 = arith.constant 0 : i32
    return %c0_i32, %c0_i32_0 : i32, i32
  }
  func.func @transform_7(%arg0: i32) -> (i32, i32) {
    %c0_i32 = arith.constant 0 : i32
    %c0_i32_0 = arith.constant 0 : i32
    return %arg0, %c0_i32 : i32, i32
  }
}

</mosaic_0001>

<bundles_post_ra>
// kernel: tpu_custom_call.1
= control target key start
LH: loop header
LB: loop body
LE: loop exit
PB: predicated region body
PF: predicated region fallthrough
CT: control target
= control target key end

     0   :  { %12 = vsyncpa [#allocation3], 0  ;;  %s892_s0 = inlined_call_operand.vmem [shape: bf16[16,4], index: 0, kind: input, shape index: {}]   ;;  %s893_s1 = inlined_call_operand.vmem [shape: f32[16,1], index: 1, kind: input, shape index: {}]   ;;  %s894_s2 = inlined_call_operand.vmem [shape: bf16[4,128], index: 2, kind: input, shape index: {}]   ;;  %s895_s3 = inlined_call_operand.vmem [shape: f32[1,128], index: 3, kind: input, shape index: {}]   ;;  %s896_s4 = inlined_call_operand.hbm [shape: bf16[2,128,128], index: 4, kind: input, shape index: {}]   ;;  %s897_s5 = inlined_call_operand.hbm [shape: bf16[128,128], index: 5, kind: input, shape index: {}]   ;;  %s898_s6 = inlined_call_operand.vmem [shape: f32[1,128], index: 6, kind: input, shape index: {}]   ;;  %s899_s7 = inlined_call_operand.hbm [shape: f32[16,128], index: 7, kind: output, shape index: {}]  }
   0x1   :  { %13 = vsyncpa [#allocation6], 0 }
   0x2   :  { %14 = vsyncpa [#allocation4], 0  ;;  %s27_s26 = sshll.u32 %s896_s4, 4  ;;  %s781_s27 = smov [#allocation2]   ;;  %s28_s26 = int_to_ptr.hbm [resolvable:$true] %s27_s26 }
   0x3   :  { %s29_s28 = sshll.u32 %s781_s27, 4  ;;  %s40_s8 = sshll.u32 %s897_s5, 4  ;;  %s30_s28 = int_to_ptr.vmem [resolvable:$true] %s29_s28  ;;  %s41_s8 = int_to_ptr.hbm [resolvable:$true] %s40_s8 }
   0x4   :  { %s782_s9 = smov 64   ;;  %s783_s10 = smov 4  }
   0x5   :  { %35 = dma.hbm_to_vmem [thread:$0]  %s28_s26, 2048, %s30_s28, [#allocation3], %s782_s9, %s782_s9, %s783_s10  }
   0x6   :  { %s784_s11 = smov [#allocation5]  }
   0x7   :  { %s42_s12 = sshll.u32 %s784_s11, 4  ;;  %s43_s12 = int_to_ptr.vmem [resolvable:$true] %s42_s12 }
   0x8   :  { %48 = dma.hbm_to_vmem [thread:$0]  %s41_s8, 1024, %s43_s12, [#allocation6], %s782_s9, %s782_s9, %s783_s10  }
   0x9   :  { %775 = dma.done.wait [#allocation3], 2048  }
   0xa   :  { %776 = vsyncadd [#allocation3], 4294965248 }
   0xb   :  { %777 = dma.done.wait [#allocation6], 1024  }
   0xc   :  { %778 = vsyncadd [#allocation6], 4294966272  ;;  %v785_v0 = vmov 0   ;;  %vm90_vm0 = vcmask 1041408   ;;  %v62_v1 = vld [vmem:[%s894_s2] sm:$0x3] }
   0xd   :  { %688 = vset.pattern.permute.xlu0 %v785_v0  ;;  %v63_v2 = vld [vmem:[%s893_s1] sm:$0xff]  ;;  %v92_v3 = vsel %vm90_vm0, %v62_v1, 0  ;;  %v663_v5 = vld [vmem:[#allocation2 + $0x38] sm:$0xff]  ;;  %vm86_vm1 = vcmask 31744   ;;  %v662_v6 = vld [vmem:[#allocation2 + $0x30] sm:$0xff]  ;;  %s786_s19 = smov [#allocation7]  }
   0xe   :  { %v655_v4 = vld [vmem:[%s892_s0] sm:$0xff]  ;;  %68 = vperm.xlu0 %688, %v63_v2   ;;  %101 = vmatpush.bf16.msra.mxu0 %v92_v3  ;;  %v64_v7 = vld [vmem:[%s893_s1 + $0x8] sm:$0xff]  ;;  %v659_v10 = vld [vmem:[#allocation2 + $0x18] sm:$0xff]  ;;  %s534_s20 = sshll.u32 %s786_s19, 4  ;;  %s536_s23 = sshll.u32 %s899_s7, 4  ;;  %s535_s20 = int_to_ptr.vmem [resolvable:$true] %s534_s20  ;;  %s537_s23 = int_to_ptr.hbm [resolvable:$true] %s536_s23 }
   0xf   :  { %173 = vmatpush.bf16.msra.mxu1 %v663_v5  ;;  %v661_v8 = vld [vmem:[#allocation2 + $0x28] sm:$0xff]  ;;  %v660_v9 = vld [vmem:[#allocation2 + $0x20] sm:$0xff]  ;;  %v658_v11 = vld [vmem:[#allocation2 + $0x10] sm:$0xff]  ;;  %s787_s24 = smov 128  }
  0x10   :  { %v657_v12 = vld [vmem:[#allocation2 + $0x8] sm:$0xff]  ;;  %v656_v13 = vld [vmem:[#allocation2] sm:$0xff]  ;;  %v671_v24 = vld [vmem:[#allocation2 + $0x78] sm:$0xff] }
  0x11   :  { %554 = vmatmul.msk.bf16.vlgmr.msra.gmra.mxu0 %vm86_vm1, %v655_v4  ;;  %v689_v16 = vld [vmem:[%s895_s3] ss:$0 sm:$0xff]  ;;  %341 = vmatpush.bf16.msra.mxu2 %v671_v24  ;;  %v670_v28 = vld [vmem:[#allocation2 + $0x70] sm:$0xff]  ;;  %v669_v32 = vld [vmem:[#allocation2 + $0x68] sm:$0xff] }
  0x12   :  { %v668_v38 = vld [vmem:[#allocation2 + $0x60] sm:$0xff]  ;;  %v667_v44 = vld [vmem:[#allocation2 + $0x58] sm:$0xff]  ;;  %v666_v52 = vld [vmem:[#allocation2 + $0x50] sm:$0xff] }
  0x13   :  { %174 = vmatpush.bf16.msra.mxu1 %v662_v6  ;;  %v665_v60 = vld [vmem:[#allocation2 + $0x48] sm:$0xff]  ;;  %v664_v2 = vld [vmem:[#allocation2 + $0x40] sm:$0xff] }
  0x15   :  { %342 = vmatpush.bf16.msra.mxu2 %v670_v28 }
  0x16   :  { %73 = vperm.xlu0 %688, %v64_v7  }
  0x17   :  { %175 = vmatpush.bf16.msra.mxu1 %v661_v8 }
  0x19   :  { %343 = vmatpush.bf16.msra.mxu2 %v669_v32 }
  0x1b   :  { %176 = vmatpush.bf16.msra.mxu1 %v660_v9 }
  0x1d   :  { %344 = vmatpush.bf16.msra.mxu2 %v668_v38 }
  0x1f   :  { %177 = vmatpush.bf16.msra.mxu1 %v659_v10 }
  0x21   :  { %345 = vmatpush.bf16.msra.mxu2 %v667_v44 }
  0x23   :  { %178 = vmatpush.bf16.msra.mxu1 %v658_v11 }
  0x25   :  { %346 = vmatpush.bf16.msra.mxu2 %v666_v52  ;;  %v679_v52 = vld [vmem:[#allocation5 + $0x38] sm:$0xff] }
  0x26   :  { %512 = vmatpush.bf16.msra.mxu3 %v679_v52 }
  0x27   :  { %179 = vmatpush.bf16.msra.mxu1 %v657_v12 }
  0x29   :  { %347 = vmatpush.bf16.msra.mxu2 %v665_v60 }
  0x2b   :  { %180 = vmatpush.bf16.msra.mxu1 %v656_v13 }
  0x2d   :  { %348 = vmatpush.bf16.msra.mxu2 %v664_v2 }
  0x80   :  { %v69_v14 = vpop.permute.xlu0 %68 }
  0x81   :  { %v79_v18 = vmul.f32 %v689_v16, %v69_v14 }
  0x88   :  { %v74_v17 = vpop.permute.xlu0 %73 }
  0x89   :  { %v80_v19 = vmul.f32 %v689_v16, %v74_v17 }
  0x8e   :  { %v103_v15 = vpop.f32.mrf.mxu0 }
  0x8f   :  { %v104_v21 = vadd.f32 %v103_v15, %v79_v18 }
  0x96   :  { %v105_v20 = vpop.f32.mrf.mxu0 }
  0x97   :  { %v106_v22 = vadd.f32 %v105_v20, %v80_v19 }
  0x99   :  { %v108_v23 = vpack.c.bf16 %v106_v22, %v104_v21 }
  0x9b   :  { %181 = vmatmul.bf16.vlgmr.msra.gmra.mxu1 %v108_v23 }
 0x118   :  { %v850_v25 = vpop.f32.mrf.mxu1 }
 0x119   :  { %v853_v26 = vmul.f32 0.70710677, %v850_v25 }
 0x11b   :  { %v191_v27 = vmul.f32 %v853_v26, %v853_v26 }
 0x11d   :  { %v192_v29 = vmin.f32 %v191_v27, 16.0 }
 0x11f   :  { %v193_v30 = vmul.f32 2.1237322e-06, %v192_v29  ;;  %v204_v31 = vmul.f32 3.8918573e-05, %v192_v29 }
 0x120   :  { %v857_v33 = vpop.f32.mrf.mxu1 }
 0x121   :  { %v194_v34 = vadd.f32 0.00028619796, %v193_v30  ;;  %v205_v35 = vadd.f32 0.001143296, %v204_v31  ;;  %v860_v36 = vmul.f32 0.70710677, %v857_v33 }
 0x123   :  { %v206_v37 = vmul.f32 %v205_v35, %v192_v29  ;;  %v231_v39 = vmul.f32 %v860_v36, %v860_v36  ;;  %v195_v40 = vmul.f32 %v194_v34, %v192_v29 }
 0x125   :  { %v207_v41 = vadd.f32 0.014752088, %v206_v37  ;;  %v232_v42 = vmin.f32 %v231_v39, 16.0  ;;  %v196_v47 = vadd.f32 0.0036580483, %v195_v40 }
 0x127   :  { %v208_v43 = vmul.f32 %v207_v41, %v192_v29  ;;  %v233_v45 = vmul.f32 2.1237322e-06, %v232_v42  ;;  %v244_v46 = vmul.f32 3.8918573e-05, %v232_v42  ;;  %v197_v55 = vmul.f32 %v196_v47, %v192_v29 }
 0x128   :  { %v188_v47 = vmul.f32 0.5, %v857_v33 }
 0x129   :  { %v209_v48 = vadd.f32 0.112945676, %v208_v43  ;;  %v234_v49 = vadd.f32 0.00028619796, %v233_v45  ;;  %v245_v50 = vadd.f32 0.001143296, %v244_v46 }
 0x12a   :  { %v198_v62 = vadd.f32 0.05243302, %v197_v55  ;;  %v187_v46 = vmul.f32 0.5, %v850_v25  ;;  %v678_v55 = vld [vmem:[#allocation5 + $0x30] sm:$0xff] }
 0x12b   :  { %v210_v51 = vmul.f32 %v209_v48, %v192_v29  ;;  %v235_v53 = vmul.f32 %v234_v49, %v232_v42  ;;  %v246_v54 = vmul.f32 %v245_v50, %v232_v42  ;;  %513 = vmatpush.bf16.msra.mxu3 %v678_v55 }
 0x12c   :  { %v199_v4 = vmul.f32 %v198_v62, %v192_v29 }
 0x12d   :  { %v211_v56 = vadd.f32 0.4994258, %v210_v51  ;;  %v236_v57 = vadd.f32 0.0036580483, %v235_v53  ;;  %v247_v58 = vadd.f32 0.014752088, %v246_v54 }
 0x12e   :  { %v200_v9 = vadd.f32 0.18741608, %v199_v4 }
 0x12f   :  { %v212_v59 = vmul.f32 %v211_v56, %v192_v29  ;;  %v248_v61 = vmul.f32 %v247_v58, %v232_v42  ;;  %v237_v0 = vmul.f32 %v236_v57, %v232_v42  ;;  %v677_v57 = vld [vmem:[#allocation5 + $0x28] sm:$0xff] }
 0x130   :  { %v201_v14 = vmul.f32 %v200_v9, %v192_v29  ;;  %514 = vmatpush.bf16.msra.mxu3 %v677_v57 }
 0x131   :  { %v213_v63 = vadd.f32 1.0, %v212_v59  ;;  %v249_v1 = vadd.f32 0.112945676, %v248_v61  ;;  %v238_v5 = vadd.f32 0.05243302, %v237_v0 }
 0x132   :  { %v202_v20 = vadd.f32 1.1283791, %v201_v14 }
 0x133   :  { %691 = vrcp.f32 %v213_v63  ;;  %v250_v3 = vmul.f32 %v249_v1, %v232_v42  ;;  %v239_v11 = vmul.f32 %v238_v5, %v232_v42  ;;  %v225_v16 = vand.u32 2147483648, %v213_v63  ;;  %v675_v5 = vld [vmem:[#allocation5 + $0x18] sm:$0xff] }
 0x134   :  { %v223_v18 = vand.u32 2147483647, %v213_v63  ;;  %vm219_vm3 = vweird.f32 %v213_v63  ;;  %v203_v30 = vmul.f32 %v202_v20, %v853_v26 }
 0x135   :  { %v251_v6 = vadd.f32 0.4994258, %v250_v3  ;;  %v240_v17 = vadd.f32 0.18741608, %v239_v11  ;;  %v226_v23 = vor.u32 1.1754944e-38, %v225_v16 }
 0x136   :  { %vm224_vm5 = vcmp.eq.f32.partialorder %v223_v18, 8.507059e+37 }
 0x137   :  { %v252_v7 = vmul.f32 %v251_v6, %v232_v42  ;;  %v241_v24 = vmul.f32 %v240_v17, %v232_v42 }
 0x139   :  { %v692_v8 = vpop.eup %691  ;;  %v253_v12 = vadd.f32 1.0, %v252_v7  ;;  %v242_v29 = vadd.f32 1.1283791, %v241_v24 }
 0x13a   :  { %v215_v10 = vmul.f32 %v692_v8, %v213_v63  ;;  %vm220_vm2 = vweird.f32 %v692_v8  ;;  %v676_v63 = vld [vmem:[#allocation5 + $0x20] sm:$0xff] }
 0x13b   :  { %693 = vrcp.f32 %v253_v12  ;;  %vm221_vm4 = vmor %vm219_vm3, %vm220_vm2  ;;  %v265_v32 = vand.u32 2147483648, %v253_v12  ;;  %v263_v37 = vand.u32 2147483647, %v253_v12  ;;  %vm259_vm7 = vweird.f32 %v253_v12  ;;  %515 = vmatpush.bf16.msra.mxu3 %v676_v63 }
 0x13c   :  { %v216_v13 = vsub.f32 1.0, %v215_v10  ;;  %v243_v40 = vmul.f32 %v242_v29, %v860_v36 }
 0x13d   :  { %v266_v39 = vor.u32 1.1754944e-38, %v265_v32  ;;  %vm264_vm9 = vcmp.eq.f32.partialorder %v263_v37, 8.507059e+37 }
 0x13e   :  { %v217_v15 = vmul.f32 %v692_v8, %v216_v13  ;;  %v674_v13 = vld [vmem:[#allocation5 + $0x10] sm:$0xff] }
 0x13f   :  { %516 = vmatpush.bf16.msra.mxu3 %v675_v5 }
 0x140   :  { %v218_v19 = vadd.f32 %v692_v8, %v217_v15 }
 0x141   :  { %v694_v21 = vpop.eup %693 }
 0x142   :  { %v222_v22 = vsel %vm221_vm4, %v692_v8, %v218_v19  ;;  %v255_v27 = vmul.f32 %v694_v21, %v253_v12  ;;  %vm260_vm6 = vweird.f32 %v694_v21 }
 0x143   :  { %v227_v28 = vsel %vm224_vm5, %v226_v23, %v222_v22  ;;  %vm261_vm8 = vmor %vm259_vm7, %vm260_vm6  ;;  %517 = vmatpush.bf16.msra.mxu3 %v674_v13 }
 0x144   :  { %v256_v31 = vsub.f32 1.0, %v255_v27  ;;  %v228_v34 = vmul.f32 %v227_v28, %v203_v30  ;;  %v672_v30 = vld [vmem:[#allocation5] sm:$0xff] }
 0x146   :  { %v257_v35 = vmul.f32 %v694_v21, %v256_v31  ;;  %v587_v42 = vclamps-f32 %v228_v34, 1.0 }
 0x148   :  { %v258_v38 = vadd.f32 %v694_v21, %v257_v35  ;;  %v271_v26 = vadd.f32 1.0, %v587_v42 }
 0x14a   :  { %v262_v41 = vsel %vm261_vm8, %v694_v21, %v258_v38  ;;  %v273_v50 = vmul.f32 %v271_v26, %v187_v46  ;;  %v673_v21 = vld [vmem:[#allocation5 + $0x8] sm:$0xff] }
 0x14b   :  { %v267_v43 = vsel %vm264_vm9, %v266_v39, %v262_v41  ;;  %518 = vmatpush.bf16.msra.mxu3 %v673_v21 }
 0x14c   :  { %v268_v44 = vmul.f32 %v267_v43, %v243_v40 }
 0x14e   :  { %v588_v45 = vclamps-f32 %v268_v44, 1.0 }
 0x14f   :  { %519 = vmatpush.bf16.msra.mxu3 %v672_v30 }
 0x150   :  { %v272_v48 = vadd.f32 1.0, %v588_v45 }
 0x152   :  { %v274_v49 = vmul.f32 %v272_v48, %v188_v47 }
 0x154   :  { %v275_v51 = vpack.c.bf16 %v274_v49, %v273_v50 }
 0x156   :  { %349 = vmatmul.bf16.vlgmr.msra.gmra.mxu2 %v275_v51 }
 0x1d9   :  { %v868_v53 = vpop.f32.mrf.mxu2 }
 0x1da   :  { %v871_v36 = vmul.f32 0.70710677, %v868_v53 }
 0x1dc   :  { %v359_v54 = vmul.f32 %v871_v36, %v871_v36 }
 0x1de   :  { %v360_v56 = vmin.f32 %v359_v54, 16.0 }
 0x1e0   :  { %v361_v25 = vmul.f32 2.1237322e-06, %v360_v56  ;;  %v372_v33 = vmul.f32 3.8918573e-05, %v360_v56 }
 0x1e1   :  { %v875_v58 = vpop.f32.mrf.mxu2 }
 0x1e2   :  { %v362_v59 = vadd.f32 0.00028619796, %v361_v25  ;;  %v373_v60 = vadd.f32 0.001143296, %v372_v33  ;;  %v878_v61 = vmul.f32 0.70710677, %v875_v58 }
 0x1e4   :  { %v374_v62 = vmul.f32 %v373_v60, %v360_v56  ;;  %v399_v0 = vmul.f32 %v878_v61, %v878_v61  ;;  %v363_v1 = vmul.f32 %v362_v59, %v360_v56 }
 0x1e6   :  { %v375_v2 = vadd.f32 0.014752088, %v374_v62  ;;  %v400_v3 = vmin.f32 %v399_v0, 16.0  ;;  %v364_v8 = vadd.f32 0.0036580483, %v363_v1 }
 0x1e8   :  { %v376_v4 = vmul.f32 %v375_v2, %v360_v56  ;;  %v401_v6 = vmul.f32 2.1237322e-06, %v400_v3  ;;  %v412_v7 = vmul.f32 3.8918573e-05, %v400_v3  ;;  %v365_v16 = vmul.f32 %v364_v8, %v360_v56 }
 0x1e9   :  { %v356_v8 = vmul.f32 0.5, %v875_v58 }
 0x1ea   :  { %v377_v9 = vadd.f32 0.112945676, %v376_v4  ;;  %v402_v10 = vadd.f32 0.00028619796, %v401_v6  ;;  %v413_v11 = vadd.f32 0.001143296, %v412_v7 }
 0x1eb   :  { %v366_v23 = vadd.f32 0.05243302, %v365_v16  ;;  %v355_v7 = vmul.f32 0.5, %v868_v53 }
 0x1ec   :  { %v378_v12 = vmul.f32 %v377_v9, %v360_v56  ;;  %v403_v14 = vmul.f32 %v402_v10, %v400_v3  ;;  %v414_v15 = vmul.f32 %v413_v11, %v400_v3 }
 0x1ed   :  { %v367_v29 = vmul.f32 %v366_v23, %v360_v56 }
 0x1ee   :  { %v379_v17 = vadd.f32 0.4994258, %v378_v12  ;;  %v404_v18 = vadd.f32 0.0036580483, %v403_v14  ;;  %v415_v19 = vadd.f32 0.014752088, %v414_v15 }
 0x1ef   :  { %v368_v38 = vadd.f32 0.18741608, %v367_v29 }
 0x1f0   :  { %v380_v20 = vmul.f32 %v379_v17, %v360_v56  ;;  %v416_v22 = vmul.f32 %v415_v19, %v400_v3  ;;  %v405_v27 = vmul.f32 %v404_v18, %v400_v3 }
 0x1f1   :  { %v369_v43 = vmul.f32 %v368_v38, %v360_v56 }
 0x1f2   :  { %v381_v24 = vadd.f32 1.0, %v380_v20  ;;  %v417_v28 = vadd.f32 0.112945676, %v416_v22  ;;  %v406_v32 = vadd.f32 0.05243302, %v405_v27 }
 0x1f3   :  { %v370_v48 = vadd.f32 1.1283791, %v369_v43 }
 0x1f4   :  { %695 = vrcp.f32 %v381_v24  ;;  %v418_v31 = vmul.f32 %v417_v28, %v400_v3  ;;  %v407_v40 = vmul.f32 %v406_v32, %v400_v3  ;;  %v393_v45 = vand.u32 2147483648, %v381_v24 }
 0x1f5   :  { %v391_v46 = vand.u32 2147483647, %v381_v24  ;;  %vm387_vm11 = vweird.f32 %v381_v24  ;;  %v371_v25 = vmul.f32 %v370_v48, %v871_v36 }
 0x1f6   :  { %v419_v34 = vadd.f32 0.4994258, %v418_v31  ;;  %v408_v26 = vadd.f32 0.18741608, %v407_v40  ;;  %v394_v51 = vor.u32 1.1754944e-38, %v393_v45 }
 0x1f7   :  { %vm392_vm13 = vcmp.eq.f32.partialorder %v391_v46, 8.507059e+37 }
 0x1f8   :  { %v420_v35 = vmul.f32 %v419_v34, %v400_v3  ;;  %v409_v52 = vmul.f32 %v408_v26, %v400_v3 }
 0x1fa   :  { %v696_v37 = vpop.eup %695  ;;  %v421_v41 = vadd.f32 1.0, %v420_v35  ;;  %v410_v56 = vadd.f32 1.1283791, %v409_v52 }
 0x1fb   :  { %v383_v39 = vmul.f32 %v696_v37, %v381_v24  ;;  %vm388_vm10 = vweird.f32 %v696_v37 }
 0x1fc   :  { %697 = vrcp.f32 %v421_v41  ;;  %vm389_vm12 = vmor %vm387_vm11, %vm388_vm10  ;;  %v433_v57 = vand.u32 2147483648, %v421_v41  ;;  %v431_v62 = vand.u32 2147483647, %v421_v41  ;;  %vm427_vm15 = vweird.f32 %v421_v41 }
 0x1fd   :  { %v384_v42 = vsub.f32 1.0, %v383_v39  ;;  %v411_v1 = vmul.f32 %v410_v56, %v878_v61  ;;  %v690_v61 = vld [vmem:[%s898_s6] ss:$0 sm:$0xff]  ;;  %s788_s6 = smov 8  }
 0x1fe   :  { %v434_v0 = vor.u32 1.1754944e-38, %v433_v57  ;;  %vm432_vm1 = vcmp.eq.f32.partialorder %v431_v62, 8.507059e+37 }
 0x1ff   :  { %v385_v44 = vmul.f32 %v696_v37, %v384_v42 }
 0x201   :  { %v386_v47 = vadd.f32 %v696_v37, %v385_v44 }
 0x202   :  { %v698_v49 = vpop.eup %697 }
 0x203   :  { %v390_v50 = vsel %vm389_vm12, %v696_v37, %v386_v47  ;;  %v423_v54 = vmul.f32 %v698_v49, %v421_v41  ;;  %vm428_vm14 = vweird.f32 %v698_v49 }
 0x204   :  { %v395_v55 = vsel %vm392_vm13, %v394_v51, %v390_v50  ;;  %vm429_vm0 = vmor %vm427_vm15, %vm428_vm14 }
 0x205   :  { %v424_v33 = vsub.f32 1.0, %v423_v54  ;;  %v396_v59 = vmul.f32 %v395_v55, %v371_v25 }
 0x207   :  { %v425_v60 = vmul.f32 %v698_v49, %v424_v33  ;;  %v621_v3 = vclamps-f32 %v396_v59, 1.0 }
 0x209   :  { %v426_v63 = vadd.f32 %v698_v49, %v425_v60  ;;  %v439_v36 = vadd.f32 1.0, %v621_v3 }
 0x20b   :  { %v430_v2 = vsel %vm429_vm0, %v698_v49, %v426_v63  ;;  %v441_v11 = vmul.f32 %v439_v36, %v355_v7 }
 0x20c   :  { %v435_v4 = vsel %vm432_vm1, %v434_v0, %v430_v2 }
 0x20d   :  { %v436_v5 = vmul.f32 %v435_v4, %v411_v1 }
 0x20f   :  { %v622_v6 = vclamps-f32 %v436_v5, 1.0 }
 0x211   :  { %v440_v9 = vadd.f32 1.0, %v622_v6 }
 0x213   :  { %v442_v10 = vmul.f32 %v440_v9, %v356_v8 }
 0x215   :  { %v443_v12 = vpack.c.bf16 %v442_v10, %v441_v11 }
 0x217   :  { %520 = vmatmul.bf16.vlgmr.msra.gmra.mxu3 %v443_v12 }
 0x29a   :  { %v521_v13 = vpop.f32.mrf.mxu3 }
 0x29b   :  { %v522_v14 = vadd.f32 %v690_v61, %v521_v13 }
 0x29d   :  { %699 = vtanh.f32 %v522_v14 }
 0x2a2   :  { %v523_v15 = vpop.f32.mrf.mxu3 }
 0x2a3   :  { %v700_v16 = vpop.eup %699  ;;  %v524_v17 = vadd.f32 %v690_v61, %v523_v15 }
 0x2a4   :  { %528 = vst [vmem:[#allocation7] sm:$0xff] %v700_v16 }
 0x2a5   :  { %701 = vtanh.f32 %v524_v17 }
 0x2ab   :  { %v702_v53 = vpop.eup %701 }
 0x2ac   :  { %529 = vst [vmem:[#allocation7 + $0x8] sm:$0xff] %v702_v53 }
 0x2ad   :  { %542 = dma.vmem_to_hbm [thread:$0]  %s535_s20, 256, %s537_s23, [#allocation4], %s787_s24, %s787_s24, %s788_s6  }
 0x2ae   :  { %779 = dma.done.wait [#allocation4], 256  }
 0x2af   :  { %780 = vsyncadd [#allocation4], 4294967040 }
 0x2b0   :  { %547 = vsyncpa [#allocation3], 1 }
 0x2b1   :  { %548 = vsyncpa [#allocation6], 1 }
 0x2b2   :  { %549 = vsyncpa [#allocation4], 1 }

// kernel: tpu_custom_call.1
= control target key start
LH: loop header
LB: loop body
LE: loop exit
PB: predicated region body
PF: predicated region fallthrough
CT: control target
= control target key end

     0   :  { %12 = vsyncpa [#allocation3], 0  ;;  %s892_s0 = inlined_call_operand.vmem [shape: bf16[16,4], index: 0, kind: input, shape index: {}]   ;;  %s893_s1 = inlined_call_operand.vmem [shape: f32[16,1], index: 1, kind: input, shape index: {}]   ;;  %s894_s2 = inlined_call_operand.vmem [shape: bf16[4,128], index: 2, kind: input, shape index: {}]   ;;  %s895_s3 = inlined_call_operand.vmem [shape: f32[1,128], index: 3, kind: input, shape index: {}]   ;;  %s896_s4 = inlined_call_operand.hbm [shape: bf16[2,128,128], index: 4, kind: input, shape index: {}]   ;;  %s897_s5 = inlined_call_operand.hbm [shape: bf16[128,128], index: 5, kind: input, shape index: {}]   ;;  %s898_s6 = inlined_call_operand.vmem [shape: f32[1,128], index: 6, kind: input, shape index: {}]   ;;  %s899_s7 = inlined_call_operand.hbm [shape: f32[16,128], index: 7, kind: output, shape index: {}]  }
   0x1   :  { %13 = vsyncpa [#allocation6], 0 }
   0x2   :  { %14 = vsyncpa [#allocation4], 0  ;;  %s27_s26 = sshll.u32 %s896_s4, 4  ;;  %s781_s27 = smov [#allocation2]   ;;  %s28_s26 = int_to_ptr.hbm [resolvable:$true] %s27_s26 }
   0x3   :  { %s29_s28 = sshll.u32 %s781_s27, 4  ;;  %s40_s8 = sshll.u32 %s897_s5, 4  ;;  %s30_s28 = int_to_ptr.vmem [resolvable:$true] %s29_s28  ;;  %s41_s8 = int_to_ptr.hbm [resolvable:$true] %s40_s8 }
   0x4   :  { %s782_s9 = smov 64   ;;  %s783_s10 = smov 4  }
   0x5   :  { %35 = dma.hbm_to_vmem [thread:$0]  %s28_s26, 2048, %s30_s28, [#allocation3], %s782_s9, %s782_s9, %s783_s10  }
   0x6   :  { %s784_s11 = smov [#allocation5]  }
   0x7   :  { %s42_s12 = sshll.u32 %s784_s11, 4  ;;  %s43_s12 = int_to_ptr.vmem [resolvable:$true] %s42_s12 }
   0x8   :  { %48 = dma.hbm_to_vmem [thread:$0]  %s41_s8, 1024, %s43_s12, [#allocation6], %s782_s9, %s782_s9, %s783_s10  }
   0x9   :  { %775 = dma.done.wait [#allocation3], 2048  }
   0xa   :  { %776 = vsyncadd [#allocation3], 4294965248 }
   0xb   :  { %777 = dma.done.wait [#allocation6], 1024  }
   0xc   :  { %778 = vsyncadd [#allocation6], 4294966272  ;;  %v785_v0 = vmov 0   ;;  %vm90_vm0 = vcmask 1041408   ;;  %v62_v1 = vld [vmem:[%s894_s2] sm:$0x3] }
   0xd   :  { %688 = vset.pattern.permute.xlu0 %v785_v0  ;;  %v63_v2 = vld [vmem:[%s893_s1] sm:$0xff]  ;;  %v92_v3 = vsel %vm90_vm0, %v62_v1, 0  ;;  %v663_v5 = vld [vmem:[#allocation2 + $0x38] sm:$0xff]  ;;  %vm86_vm1 = vcmask 31744   ;;  %v662_v6 = vld [vmem:[#allocation2 + $0x30] sm:$0xff]  ;;  %s786_s19 = smov [#allocation7]  }
   0xe   :  { %v655_v4 = vld [vmem:[%s892_s0] sm:$0xff]  ;;  %68 = vperm.xlu0 %688, %v63_v2   ;;  %101 = vmatpush.bf16.msra.mxu0 %v92_v3  ;;  %v64_v7 = vld [vmem:[%s893_s1 + $0x8] sm:$0xff]  ;;  %v659_v10 = vld [vmem:[#allocation2 + $0x18] sm:$0xff]  ;;  %s534_s20 = sshll.u32 %s786_s19, 4  ;;  %s536_s23 = sshll.u32 %s899_s7, 4  ;;  %s535_s20 = int_to_ptr.vmem [resolvable:$true] %s534_s20  ;;  %s537_s23 = int_to_ptr.hbm [resolvable:$true] %s536_s23 }
   0xf   :  { %173 = vmatpush.bf16.msra.mxu1 %v663_v5  ;;  %v661_v8 = vld [vmem:[#allocation2 + $0x28] sm:$0xff]  ;;  %v660_v9 = vld [vmem:[#allocation2 + $0x20] sm:$0xff]  ;;  %v658_v11 = vld [vmem:[#allocation2 + $0x10] sm:$0xff]  ;;  %s787_s24 = smov 128  }
  0x10   :  { %v657_v12 = vld [vmem:[#allocation2 + $0x8] sm:$0xff]  ;;  %v656_v13 = vld [vmem:[#allocation2] sm:$0xff]  ;;  %v671_v24 = vld [vmem:[#allocation2 + $0x78] sm:$0xff] }
  0x11   :  { %554 = vmatmul.msk.bf16.vlgmr.msra.gmra.mxu0 %vm86_vm1, %v655_v4  ;;  %v689_v16 = vld [vmem:[%s895_s3] ss:$0 sm:$0xff]  ;;  %341 = vmatpush.bf16.msra.mxu2 %v671_v24  ;;  %v670_v28 = vld [vmem:[#allocation2 + $0x70] sm:$0xff]  ;;  %v669_v32 = vld [vmem:[#allocation2 + $0x68] sm:$0xff] }
  0x12   :  { %v668_v38 = vld [vmem:[#allocation2 + $0x60] sm:$0xff]  ;;  %v667_v44 = vld [vmem:[#allocation2 + $0x58] sm:$0xff]  ;;  %v666_v52 = vld [vmem:[#allocation2 + $0x50] sm:$0xff] }
  0x13   :  { %174 = vmatpush.bf16.msra.mxu1 %v662_v6  ;;  %v665_v60 = vld [vmem:[#allocation2 + $0x48] sm:$0xff]  ;;  %v664_v2 = vld [vmem:[#allocation2 + $0x40] sm:$0xff] }
  0x15   :  { %342 = vmatpush.bf16.msra.mxu2 %v670_v28 }
  0x16   :  { %73 = vperm.xlu0 %688, %v64_v7  }
  0x17   :  { %175 = vmatpush.bf16.msra.mxu1 %v661_v8 }
  0x19   :  { %343 = vmatpush.bf16.msra.mxu2 %v669_v32 }
  0x1b   :  { %176 = vmatpush.bf16.msra.mxu1 %v660_v9 }
  0x1d   :  { %344 = vmatpush.bf16.msra.mxu2 %v668_v38 }
  0x1f   :  { %177 = vmatpush.bf16.msra.mxu1 %v659_v10 }
  0x21   :  { %345 = vmatpush.bf16.msra.mxu2 %v667_v44 }
  0x23   :  { %178 = vmatpush.bf16.msra.mxu1 %v658_v11 }
  0x25   :  { %346 = vmatpush.bf16.msra.mxu2 %v666_v52  ;;  %v679_v52 = vld [vmem:[#allocation5 + $0x38] sm:$0xff] }
  0x26   :  { %512 = vmatpush.bf16.msra.mxu3 %v679_v52 }
  0x27   :  { %179 = vmatpush.bf16.msra.mxu1 %v657_v12 }
  0x29   :  { %347 = vmatpush.bf16.msra.mxu2 %v665_v60 }
  0x2b   :  { %180 = vmatpush.bf16.msra.mxu1 %v656_v13 }
  0x2d   :  { %348 = vmatpush.bf16.msra.mxu2 %v664_v2 }
  0x80   :  { %v69_v14 = vpop.permute.xlu0 %68 }
  0x81   :  { %v79_v18 = vmul.f32 %v689_v16, %v69_v14 }
  0x88   :  { %v74_v17 = vpop.permute.xlu0 %73 }
  0x89   :  { %v80_v19 = vmul.f32 %v689_v16, %v74_v17 }
  0x8e   :  { %v103_v15 = vpop.f32.mrf.mxu0 }
  0x8f   :  { %v104_v21 = vadd.f32 %v103_v15, %v79_v18 }
  0x96   :  { %v105_v20 = vpop.f32.mrf.mxu0 }
  0x97   :  { %v106_v22 = vadd.f32 %v105_v20, %v80_v19 }
  0x99   :  { %v108_v23 = vpack.c.bf16 %v106_v22, %v104_v21 }
  0x9b   :  { %181 = vmatmul.bf16.vlgmr.msra.gmra.mxu1 %v108_v23 }
 0x118   :  { %v850_v25 = vpop.f32.mrf.mxu1 }
 0x119   :  { %v853_v26 = vmul.f32 0.70710677, %v850_v25 }
 0x11b   :  { %v191_v27 = vmul.f32 %v853_v26, %v853_v26 }
 0x11d   :  { %v192_v29 = vmin.f32 %v191_v27, 16.0 }
 0x11f   :  { %v193_v30 = vmul.f32 2.1237322e-06, %v192_v29  ;;  %v204_v31 = vmul.f32 3.8918573e-05, %v192_v29 }
 0x120   :  { %v857_v33 = vpop.f32.mrf.mxu1 }
 0x121   :  { %v194_v34 = vadd.f32 0.00028619796, %v193_v30  ;;  %v205_v35 = vadd.f32 0.001143296, %v204_v31  ;;  %v860_v36 = vmul.f32 0.70710677, %v857_v33 }
 0x123   :  { %v206_v37 = vmul.f32 %v205_v35, %v192_v29  ;;  %v231_v39 = vmul.f32 %v860_v36, %v860_v36  ;;  %v195_v40 = vmul.f32 %v194_v34, %v192_v29 }
 0x125   :  { %v207_v41 = vadd.f32 0.014752088, %v206_v37  ;;  %v232_v42 = vmin.f32 %v231_v39, 16.0  ;;  %v196_v47 = vadd.f32 0.0036580483, %v195_v40 }
 0x127   :  { %v208_v43 = vmul.f32 %v207_v41, %v192_v29  ;;  %v233_v45 = vmul.f32 2.1237322e-06, %v232_v42  ;;  %v244_v46 = vmul.f32 3.8918573e-05, %v232_v42  ;;  %v197_v55 = vmul.f32 %v196_v47, %v192_v29 }
 0x128   :  { %v188_v47 = vmul.f32 0.5, %v857_v33 }
 0x129   :  { %v209_v48 = vadd.f32 0.112945676, %v208_v43  ;;  %v234_v49 = vadd.f32 0.00028619796, %v233_v45  ;;  %v245_v50 = vadd.f32 0.001143296, %v244_v46 }
 0x12a   :  { %v198_v62 = vadd.f32 0.05243302, %v197_v55  ;;  %v187_v46 = vmul.f32 0.5, %v850_v25  ;;  %v678_v55 = vld [vmem:[#allocation5 + $0x30] sm:$0xff] }
 0x12b   :  { %v210_v51 = vmul.f32 %v209_v48, %v192_v29  ;;  %v235_v53 = vmul.f32 %v234_v49, %v232_v42  ;;  %v246_v54 = vmul.f32 %v245_v50, %v232_v42  ;;  %513 = vmatpush.bf16.msra.mxu3 %v678_v55 }
 0x12c   :  { %v199_v4 = vmul.f32 %v198_v62, %v192_v29 }
 0x12d   :  { %v211_v56 = vadd.f32 0.4994258, %v210_v51  ;;  %v236_v57 = vadd.f32 0.0036580483, %v235_v53  ;;  %v247_v58 = vadd.f32 0.014752088, %v246_v54 }
 0x12e   :  { %v200_v9 = vadd.f32 0.18741608, %v199_v4 }
 0x12f   :  { %v212_v59 = vmul.f32 %v211_v56, %v192_v29  ;;  %v248_v61 = vmul.f32 %v247_v58, %v232_v42  ;;  %v237_v0 = vmul.f32 %v236_v57, %v232_v42  ;;  %v677_v57 = vld [vmem:[#allocation5 + $0x28] sm:$0xff] }
 0x130   :  { %v201_v14 = vmul.f32 %v200_v9, %v192_v29  ;;  %514 = vmatpush.bf16.msra.mxu3 %v677_v57 }
 0x131   :  { %v213_v63 = vadd.f32 1.0, %v212_v59  ;;  %v249_v1 = vadd.f32 0.112945676, %v248_v61  ;;  %v238_v5 = vadd.f32 0.05243302, %v237_v0 }
 0x132   :  { %v202_v20 = vadd.f32 1.1283791, %v201_v14 }
 0x133   :  { %691 = vrcp.f32 %v213_v63  ;;  %v250_v3 = vmul.f32 %v249_v1, %v232_v42  ;;  %v239_v11 = vmul.f32 %v238_v5, %v232_v42  ;;  %v225_v16 = vand.u32 2147483648, %v213_v63  ;;  %v675_v5 = vld [vmem:[#allocation5 + $0x18] sm:$0xff] }
 0x134   :  { %v223_v18 = vand.u32 2147483647, %v213_v63  ;;  %vm219_vm3 = vweird.f32 %v213_v63  ;;  %v203_v30 = vmul.f32 %v202_v20, %v853_v26 }
 0x135   :  { %v251_v6 = vadd.f32 0.4994258, %v250_v3  ;;  %v240_v17 = vadd.f32 0.18741608, %v239_v11  ;;  %v226_v23 = vor.u32 1.1754944e-38, %v225_v16 }
 0x136   :  { %vm224_vm5 = vcmp.eq.f32.partialorder %v223_v18, 8.507059e+37 }
 0x137   :  { %v252_v7 = vmul.f32 %v251_v6, %v232_v42  ;;  %v241_v24 = vmul.f32 %v240_v17, %v232_v42 }
 0x139   :  { %v692_v8 = vpop.eup %691  ;;  %v253_v12 = vadd.f32 1.0, %v252_v7  ;;  %v242_v29 = vadd.f32 1.1283791, %v241_v24 }
 0x13a   :  { %v215_v10 = vmul.f32 %v692_v8, %v213_v63  ;;  %vm220_vm2 = vweird.f32 %v692_v8  ;;  %v676_v63 = vld [vmem:[#allocation5 + $0x20] sm:$0xff] }
 0x13b   :  { %693 = vrcp.f32 %v253_v12  ;;  %vm221_vm4 = vmor %vm219_vm3, %vm220_vm2  ;;  %v265_v32 = vand.u32 2147483648, %v253_v12  ;;  %v263_v37 = vand.u32 2147483647, %v253_v12  ;;  %vm259_vm7 = vweird.f32 %v253_v12  ;;  %515 = vmatpush.bf16.msra.mxu3 %v676_v63 }
 0x13c   :  { %v216_v13 = vsub.f32 1.0, %v215_v10  ;;  %v243_v40 = vmul.f32 %v242_v29, %v860_v36 }
 0x13d   :  { %v266_v39 = vor.u32 1.1754944e-38, %v265_v32  ;;  %vm264_vm9 = vcmp.eq.f32.partialorder %v263_v37, 8.507059e+37 }
 0x13e   :  { %v217_v15 = vmul.f32 %v692_v8, %v216_v13  ;;  %v674_v13 = vld [vmem:[#allocation5 + $0x10] sm:$0xff] }
 0x13f   :  { %516 = vmatpush.bf16.msra.mxu3 %v675_v5 }
 0x140   :  { %v218_v19 = vadd.f32 %v692_v8, %v217_v15 }
 0x141   :  { %v694_v21 = vpop.eup %693 }
 0x142   :  { %v222_v22 = vsel %vm221_vm4, %v692_v8, %v218_v19  ;;  %v255_v27 = vmul.f32 %v694_v21, %v253_v12  ;;  %vm260_vm6 = vweird.f32 %v694_v21 }
 0x143   :  { %v227_v28 = vsel %vm224_vm5, %v226_v23, %v222_v22  ;;  %vm261_vm8 = vmor %vm259_vm7, %vm260_vm6  ;;  %517 = vmatpush.bf16.msra.mxu3 %v674_v13 }
 0x144   :  { %v256_v31 = vsub.f32 1.0, %v255_v27  ;;  %v228_v34 = vmul.f32 %v227_v28, %v203_v30  ;;  %v672_v30 = vld [vmem:[#allocation5] sm:$0xff] }
 0x146   :  { %v257_v35 = vmul.f32 %v694_v21, %v256_v31  ;;  %v587_v42 = vclamps-f32 %v228_v34, 1.0 }
 0x148   :  { %v258_v38 = vadd.f32 %v694_v21, %v257_v35  ;;  %v271_v26 = vadd.f32 1.0, %v587_v42 }
 0x14a   :  { %v262_v41 = vsel %vm261_vm8, %v694_v21, %v258_v38  ;;  %v273_v50 = vmul.f32 %v271_v26, %v187_v46  ;;  %v673_v21 = vld [vmem:[#allocation5 + $0x8] sm:$0xff] }
 0x14b   :  { %v267_v43 = vsel %vm264_vm9, %v266_v39, %v262_v41  ;;  %518 = vmatpush.bf16.msra.mxu3 %v673_v21 }
 0x14c   :  { %v268_v44 = vmul.f32 %v267_v43, %v243_v40 }
 0x14e   :  { %v588_v45 = vclamps-f32 %v268_v44, 1.0 }
 0x14f   :  { %519 = vmatpush.bf16.msra.mxu3 %v672_v30 }
 0x150   :  { %v272_v48 = vadd.f32 1.0, %v588_v45 }
 0x152   :  { %v274_v49 = vmul.f32 %v272_v48, %v188_v47 }
 0x154   :  { %v275_v51 = vpack.c.bf16 %v274_v49, %v273_v50 }
 0x156   :  { %349 = vmatmul.bf16.vlgmr.msra.gmra.mxu2 %v275_v51 }
 0x1d9   :  { %v868_v53 = vpop.f32.mrf.mxu2 }
 0x1da   :  { %v871_v36 = vmul.f32 0.70710677, %v868_v53 }
 0x1dc   :  { %v359_v54 = vmul.f32 %v871_v36, %v871_v36 }
 0x1de   :  { %v360_v56 = vmin.f32 %v359_v54, 16.0 }
 0x1e0   :  { %v361_v25 = vmul.f32 2.1237322e-06, %v360_v56  ;;  %v372_v33 = vmul.f32 3.8918573e-05, %v360_v56 }
 0x1e1   :  { %v875_v58 = vpop.f32.mrf.mxu2 }
 0x1e2   :  { %v362_v59 = vadd.f32 0.00028619796, %v361_v25  ;;  %v373_v60 = vadd.f32 0.001143296, %v372_v33  ;;  %v878_v61 = vmul.f32 0.70710677, %v875_v58 }
 0x1e4   :  { %v374_v62 = vmul.f32 %v373_v60, %v360_v56  ;;  %v399_v0 = vmul.f32 %v878_v61, %v878_v61  ;;  %v363_v1 = vmul.f32 %v362_v59, %v360_v56 }
 0x1e6   :  { %v375_v2 = vadd.f32 0.014752088, %v374_v62  ;;  %v400_v3 = vmin.f32 %v399_v0, 16.0  ;;  %v364_v8 = vadd.f32 0.0036580483, %v363_v1 }
 0x1e8   :  { %v376_v4 = vmul.f32 %v375_v2, %v360_v56  ;;  %v401_v6 = vmul.f32 2.1237322e-06, %v400_v3  ;;  %v412_v7 = vmul.f32 3.8918573e-05, %v400_v3  ;;  %v365_v16 = vmul.f32 %v364_v8, %v360_v56 }
 0x1e9   :  { %v356_v8 = vmul.f32 0.5, %v875_v58 }
 0x1ea   :  { %v377_v9 = vadd.f32 0.112945676, %v376_v4  ;;  %v402_v10 = vadd.f32 0.00028619796, %v401_v6  ;;  %v413_v11 = vadd.f32 0.001143296, %v412_v7 }
 0x1eb   :  { %v366_v23 = vadd.f32 0.05243302, %v365_v16  ;;  %v355_v7 = vmul.f32 0.5, %v868_v53 }
 0x1ec   :  { %v378_v12 = vmul.f32 %v377_v9, %v360_v56  ;;  %v403_v14 = vmul.f32 %v402_v10, %v400_v3  ;;  %v414_v15 = vmul.f32 %v413_v11, %v400_v3 }
 0x1ed   :  { %v367_v29 = vmul.f32 %v366_v23, %v360_v56 }
 0x1ee   :  { %v379_v17 = vadd.f32 0.4994258, %v378_v12  ;;  %v404_v18 = vadd.f32 0.0036580483, %v403_v14  ;;  %v415_v19 = vadd.f32 0.014752088, %v414_v15 }
 0x1ef   :  { %v368_v38 = vadd.f32 0.18741608, %v367_v29 }
 0x1f0   :  { %v380_v20 = vmul.f32 %v379_v17, %v360_v56  ;;  %v416_v22 = vmul.f32 %v415_v19, %v400_v3  ;;  %v405_v27 = vmul.f32 %v404_v18, %v400_v3 }
 0x1f1   :  { %v369_v43 = vmul.f32 %v368_v38, %v360_v56 }
 0x1f2   :  { %v381_v24 = vadd.f32 1.0, %v380_v20  ;;  %v417_v28 = vadd.f32 0.112945676, %v416_v22  ;;  %v406_v32 = vadd.f32 0.05243302, %v405_v27 }
 0x1f3   :  { %v370_v48 = vadd.f32 1.1283791, %v369_v43 }
 0x1f4   :  { %695 = vrcp.f32 %v381_v24  ;;  %v418_v31 = vmul.f32 %v417_v28, %v400_v3  ;;  %v407_v40 = vmul.f32 %v406_v32, %v400_v3  ;;  %v393_v45 = vand.u32 2147483648, %v381_v24 }
 0x1f5   :  { %v391_v46 = vand.u32 2147483647, %v381_v24  ;;  %vm387_vm11 = vweird.f32 %v381_v24  ;;  %v371_v25 = vmul.f32 %v370_v48, %v871_v36 }
 0x1f6   :  { %v419_v34 = vadd.f32 0.4994258, %v418_v31  ;;  %v408_v26 = vadd.f32 0.18741608, %v407_v40  ;;  %v394_v51 = vor.u32 1.1754944e-38, %v393_v45 }
 0x1f7   :  { %vm392_vm13 = vcmp.eq.f32.partialorder %v391_v46, 8.507059e+37 }
 0x1f8   :  { %v420_v35 = vmul.f32 %v419_v34, %v400_v3  ;;  %v409_v52 = vmul.f32 %v408_v26, %v400_v3 }
 0x1fa   :  { %v696_v37 = vpop.eup %695  ;;  %v421_v41 = vadd.f32 1.0, %v420_v35  ;;  %v410_v56 = vadd.f32 1.1283791, %v409_v52 }
 0x1fb   :  { %v383_v39 = vmul.f32 %v696_v37, %v381_v24  ;;  %vm388_vm10 = vweird.f32 %v696_v37 }
 0x1fc   :  { %697 = vrcp.f32 %v421_v41  ;;  %vm389_vm12 = vmor %vm387_vm11, %vm388_vm10  ;;  %v433_v57 = vand.u32 2147483648, %v421_v41  ;;  %v431_v62 = vand.u32 2147483647, %v421_v41  ;;  %vm427_vm15 = vweird.f32 %v421_v41 }
 0x1fd   :  { %v384_v42 = vsub.f32 1.0, %v383_v39  ;;  %v411_v1 = vmul.f32 %v410_v56, %v878_v61  ;;  %v690_v61 = vld [vmem:[%s898_s6] ss:$0 sm:$0xff]  ;;  %s788_s6 = smov 8  }
 0x1fe   :  { %v434_v0 = vor.u32 1.1754944e-38, %v433_v57  ;;  %vm432_vm1 = vcmp.eq.f32.partialorder %v431_v62, 8.507059e+37 }
 0x1ff   :  { %v385_v44 = vmul.f32 %v696_v37, %v384_v42 }
 0x201   :  { %v386_v47 = vadd.f32 %v696_v37, %v385_v44 }
 0x202   :  { %v698_v49 = vpop.eup %697 }
 0x203   :  { %v390_v50 = vsel %vm389_vm12, %v696_v37, %v386_v47  ;;  %v423_v54 = vmul.f32 %v698_v49, %v421_v41  ;;  %vm428_vm14 = vweird.f32 %v698_v49 }
 0x204   :  { %v395_v55 = vsel %vm392_vm13, %v394_v51, %v390_v50  ;;  %vm429_vm0 = vmor %vm427_vm15, %vm428_vm14 }
 0x205   :  { %v424_v33 = vsub.f32 1.0, %v423_v54  ;;  %v396_v59 = vmul.f32 %v395_v55, %v371_v25 }
 0x207   :  { %v425_v60 = vmul.f32 %v698_v49, %v424_v33  ;;  %v621_v3 = vclamps-f32 %v396_v59, 1.0 }
 0x209   :  { %v426_v63 = vadd.f32 %v698_v49, %v425_v60  ;;  %v439_v36 = vadd.f32 1.0, %v621_v3 }
 0x20b   :  { %v430_v2 = vsel %vm429_vm0, %v698_v49, %v426_v63  ;;  %v441_v11 = vmul.f32 %v439_v36, %v355_v7 }
 0x20c   :  { %v435_v4 = vsel %vm432_vm1, %v434_v0, %v430_v2 }
 0x20d   :  { %v436_v5 = vmul.f32 %v435_v4, %v411_v1 }
 0x20f   :  { %v622_v6 = vclamps-f32 %v436_v5, 1.0 }
 0x211   :  { %v440_v9 = vadd.f32 1.0, %v622_v6 }
 0x213   :  { %v442_v10 = vmul.f32 %v440_v9, %v356_v8 }
 0x215   :  { %v443_v12 = vpack.c.bf16 %v442_v10, %v441_v11 }
 0x217   :  { %520 = vmatmul.bf16.vlgmr.msra.gmra.mxu3 %v443_v12 }
 0x29a   :  { %v521_v13 = vpop.f32.mrf.mxu3 }
 0x29b   :  { %v522_v14 = vadd.f32 %v690_v61, %v521_v13 }
 0x29d   :  { %699 = vtanh.f32 %v522_v14 }
 0x2a2   :  { %v523_v15 = vpop.f32.mrf.mxu3 }
 0x2a3   :  { %v700_v16 = vpop.eup %699  ;;  %v524_v17 = vadd.f32 %v690_v61, %v523_v15 }
 0x2a4   :  { %528 = vst [vmem:[#allocation7] sm:$0xff] %v700_v16 }
 0x2a5   :  { %701 = vtanh.f32 %v524_v17 }
 0x2ab   :  { %v702_v53 = vpop.eup %701 }
 0x2ac   :  { %529 = vst [vmem:[#allocation7 + $0x8] sm:$0xff] %v702_v53 }
 0x2ad   :  { %542 = dma.vmem_to_hbm [thread:$0]  %s535_s20, 256, %s537_s23, [#allocation4], %s787_s24, %s787_s24, %s788_s6  }
 0x2ae   :  { %779 = dma.done.wait [#allocation4], 256  }
 0x2af   :  { %780 = vsyncadd [#allocation4], 4294967040 }
 0x2b0   :  { %547 = vsyncpa [#allocation3], 1 }
 0x2b1   :  { %548 = vsyncpa [#allocation6], 1 }
 0x2b2   :  { %549 = vsyncpa [#allocation4], 1 }

</bundles_post_ra>
